<compile_context>
chip_gen: v6e
topology: v6e:2x2x1
jax: 0.10.0
libtpu: 0.0.40
codegen_flags: <defaults>
</compile_context>

<pallas_src>
import functools

import jax
import jax.numpy as jnp
import numpy as np
from jax.experimental import pallas as pl


def bov_kernel(tok_ref, emb_ref, w_ref, b_ref, out_ref, *, batch, seq_len):
    # tok_ref: (B*S, 1) int32   token ids, flattened row-major
    # emb_ref: (Vp, E)  f32     embedding table, vocab zero-padded to lane multiple
    # w_ref:   (E, Op)  f32     Linear weight (torch W.T), output zero-padded to 128
    # b_ref:   (1, Op)  f32     Linear bias (zero-padded)
    # out_ref: (B, Op)  f32     padded logits slab
    bs = batch * seq_len
    vp = emb_ref.shape[0]

    # One-hot token matrix on the VPU: onehot[i, v] = (tok[i] == v).
    tok = tok_ref[...]                                              # (BS, 1)
    vocab_iota = jax.lax.broadcasted_iota(jnp.int32, (bs, vp), 1)   # (BS, Vp)
    onehot = (tok == vocab_iota).astype(jnp.float32)                # (BS, Vp)

    # Bag-mean pooling matrix: pool[b, i] = 1/S iff flat token i belongs to row b.
    row = jax.lax.broadcasted_iota(jnp.int32, (batch, bs), 0)
    col = jax.lax.broadcasted_iota(jnp.int32, (batch, bs), 1)
    start = row * seq_len
    pool = jnp.where((col >= start) & (col < start + seq_len),
                     jnp.float32(1.0 / seq_len),
                     jnp.float32(0.0))                              # (B, BS)

    # EmbeddingBag(mode='mean') as two MXU matmuls, then the fused batched Linear.
    counts = jnp.dot(pool, onehot, preferred_element_type=jnp.float32)        # (B, Vp)
    pooled = jnp.dot(counts, emb_ref[...], preferred_element_type=jnp.float32)  # (B, E)
    out_ref[...] = (jnp.dot(pooled, w_ref[...],
                            preferred_element_type=jnp.float32)
                    + b_ref[...])                                             # (B, Op)


def bov_forward(tokens, emb, w_out, b_out):
    """tokens: (B, S) int; emb: (V, E) f32; w_out: (E, O) f32 (= torch W.T); b_out: (1, O) f32."""
    B, S = tokens.shape
    V, E = emb.shape
    O = w_out.shape[1]

    VP = ((V + 127) // 128) * 128    # pad vocab to lane multiple (one-hot lane dim)
    OP = ((O + 127) // 128) * 128    # pad output dim for lane-dense stores

    emb_pad = jnp.zeros((VP, E), jnp.float32).at[:V, :].set(emb.astype(jnp.float32))
    w_pad = jnp.zeros((E, OP), jnp.float32).at[:, :O].set(w_out.astype(jnp.float32))
    b_pad = jnp.zeros((1, OP), jnp.float32).at[:, :O].set(b_out.astype(jnp.float32))
    tok2d = tokens.astype(jnp.int32).reshape(B * S, 1)

    out = pl.pallas_call(
        functools.partial(bov_kernel, batch=B, seq_len=int(S)),
        out_shape=jax.ShapeDtypeStruct((B, OP), jnp.float32),
        in_specs=[
            pl.BlockSpec((B * S, 1), lambda: (0, 0)),
            pl.BlockSpec((VP, E), lambda: (0, 0)),
            pl.BlockSpec((E, OP), lambda: (0, 0)),
            pl.BlockSpec((1, OP), lambda: (0, 0)),
        ],
        out_specs=pl.BlockSpec((B, OP), lambda: (0, 0)),
    )(tok2d, emb_pad, w_pad, b_pad)
    return out[:, :O]


def bov_reference(tokens, emb, w_out, b_out):
    """Pure-JAX reference: EmbeddingBag(mode='mean') + Linear."""
    x = jnp.take(emb.astype(jnp.float32), tokens, axis=0)    # (B, S, E)
    pooled = jnp.mean(x, axis=1)                             # (B, E)
    return pooled @ w_out + b_out                            # (B, O)


if __name__ == "__main__":
    V, E, O = 50, 32, 4      # vocab, embedding dim, output classes
    B, S = 4, 8              # batch, (padded) sequence length
    key = jax.random.PRNGKey(0)
    k_emb, k_w, k_b, k_tok = jax.random.split(key, 4)

    emb = jax.random.normal(k_emb, (V, E), jnp.float32)
    w_out = jax.random.normal(k_w, (E, O), jnp.float32) * 0.1   # (E, O) = torch W.T
    b_out = jax.random.normal(k_b, (1, O), jnp.float32) * 0.1
    tokens = jax.random.randint(k_tok, (B, S), 0, V, dtype=jnp.int32)

    logits = bov_forward(tokens, emb, w_out, b_out)
    jax.block_until_ready(logits)

    logits_ref = bov_reference(tokens, emb, w_out, b_out)
    np.testing.assert_allclose(np.asarray(logits), np.asarray(logits_ref),
                               rtol=1e-3, atol=1e-3)
    assert logits.shape == (B, O)
    print("KERNEL_OK")
</pallas_src>

<mosaic_0001>
module attributes {stable_mosaic.version = 11 : i64} {
  func.func @bov_kernel(%arg0: memref<32x1xi32, #tpu.memory_space<vmem>>, %arg1: memref<128x32xf32, #tpu.memory_space<vmem>>, %arg2: memref<32x128xf32, #tpu.memory_space<vmem>>, %arg3: memref<1x128xf32, #tpu.memory_space<vmem>>, %arg4: memref<4x128xf32, #tpu.memory_space<vmem>>) attributes {dimension_semantics = [], scalar_prefetch = 0 : i64, scratch_operands = 0 : i64, tpu.core_type = #tpu.core_type<tc>} {
    %c0 = arith.constant 0 : index
    %c0_0 = arith.constant 0 : index
    %0 = vector.load %arg0[%c0, %c0_0] : memref<32x1xi32, #tpu.memory_space<vmem>>, vector<32x1xi32>
    %1 = tpu.iota {dimensions = array<i32: 1>} : vector<32x128xi32>
    %2 = vector.broadcast %0 : vector<32x1xi32> to vector<32x128xi32>
    %3 = arith.cmpi eq, %2, %1 : vector<32x128xi32>
    %4 = arith.extui %3 : vector<32x128xi1> to vector<32x128xi32>
    %5 = arith.sitofp %4 : vector<32x128xi32> to vector<32x128xf32>
    %6 = tpu.iota {dimensions = array<i32: 0>} : vector<4x32xi32>
    %7 = tpu.iota {dimensions = array<i32: 1>} : vector<4x32xi32>
    %c8_i32 = arith.constant 8 : i32
    %8 = vector.broadcast %c8_i32 : i32 to vector<4x32xi32>
    %9 = arith.muli %6, %8 : vector<4x32xi32>
    %10 = arith.cmpi sge, %7, %9 : vector<4x32xi32>
    %c8_i32_1 = arith.constant 8 : i32
    %11 = vector.broadcast %c8_i32_1 : i32 to vector<4x32xi32>
    %12 = arith.addi %9, %11 : vector<4x32xi32>
    %13 = arith.cmpi slt, %7, %12 : vector<4x32xi32>
    %14 = arith.andi %10, %13 : vector<4x32xi1>
    %cst = arith.constant 1.250000e-01 : f32
    %cst_2 = arith.constant 0.000000e+00 : f32
    %15 = vector.broadcast %cst : f32 to vector<4x32xf32>
    %16 = vector.broadcast %cst_2 : f32 to vector<4x32xf32>
    %17 = arith.select %14, %15, %16 : vector<4x32xi1>, vector<4x32xf32>
    %cst_3 = arith.constant dense<0.000000e+00> : vector<4x128xf32>
    %18 = tpu.matmul %17, %5, %cst_3 {dimension_numbers = #tpu.dot_dimension_numbers<[1], [0], [0], [1], [0, 0, 1, 1], [], []>} : vector<4x32xf32>, vector<32x128xf32>, vector<4x128xf32> -> vector<4x128xf32>
    %c0_4 = arith.constant 0 : index
    %c0_5 = arith.constant 0 : index
    %19 = vector.load %arg1[%c0_4, %c0_5] : memref<128x32xf32, #tpu.memory_space<vmem>>, vector<128x32xf32>
    %cst_6 = arith.constant dense<0.000000e+00> : vector<4x32xf32>
    %20 = tpu.matmul %18, %19, %cst_6 {dimension_numbers = #tpu.dot_dimension_numbers<[1], [0], [0], [1], [0, 0, 1, 1], [], []>} : vector<4x128xf32>, vector<128x32xf32>, vector<4x32xf32> -> vector<4x32xf32>
    %c0_7 = arith.constant 0 : index
    %c0_8 = arith.constant 0 : index
    %21 = vector.load %arg2[%c0_7, %c0_8] : memref<32x128xf32, #tpu.memory_space<vmem>>, vector<32x128xf32>
    %cst_9 = arith.constant dense<0.000000e+00> : vector<4x128xf32>
    %22 = tpu.matmul %20, %21, %cst_9 {dimension_numbers = #tpu.dot_dimension_numbers<[1], [0], [0], [1], [0, 0, 1, 1], [], []>} : vector<4x32xf32>, vector<32x128xf32>, vector<4x128xf32> -> vector<4x128xf32>
    %c0_10 = arith.constant 0 : index
    %c0_11 = arith.constant 0 : index
    %23 = vector.load %arg3[%c0_10, %c0_11] : memref<1x128xf32, #tpu.memory_space<vmem>>, vector<1x128xf32>
    %24 = vector.broadcast %23 : vector<1x128xf32> to vector<4x128xf32>
    %25 = arith.addf %22, %24 : vector<4x128xf32>
    %c0_12 = arith.constant 0 : index
    %c0_13 = arith.constant 0 : index
    %26 = vector.load %arg4[%c0_12, %c0_13] : memref<4x128xf32, #tpu.memory_space<vmem>>, vector<4x128xf32>
    tpu.vector_store %arg4[%c0_12, %c0_13], %25 {strides = array<i32>} : memref<4x128xf32, #tpu.memory_space<vmem>>, vector<4x128xf32>,
    return
  }
}

</mosaic_0001>

<bundles_post_ra>
// kernel: tpu_custom_call.1
= control target key start
LH: loop header
LB: loop body
LE: loop exit
PB: predicated region body
PF: predicated region fallthrough
CT: control target
= control target key end

     0   :  { %v439_v2 = vmov 0   ;;  %s580_s0 = inlined_call_operand.vmem [shape: s32[32,1], index: 0, kind: input, shape index: {}]   ;;  %s581_s1 = inlined_call_operand.vmem [shape: f32[128,32], index: 1, kind: input, shape index: {}]   ;;  %s582_s2 = inlined_call_operand.vmem [shape: f32[32,128], index: 2, kind: input, shape index: {}]   ;;  %s583_s3 = inlined_call_operand.vmem [shape: f32[1,128], index: 3, kind: input, shape index: {}]   ;;  %s584_s4 = inlined_call_operand.hbm [shape: f32[4,128], index: 4, kind: output, shape index: {}]  }
   0x1   :  { %v21_v0 = vld [vmem:[%s580_s0 + $0x18] sm:$0xff]  ;;  %v19_v1 = vld [vmem:[%s580_s0 + $0x8] sm:$0xff]  ;;  %416 = vset.pattern.permute.xlu1 %v439_v2  ;;  %415 = vset.pattern.permute.xlu0 %v439_v2 }
   0x2   :  { %9 = vsyncpa [#allocation3], 0  ;;  %34 = vperm.xlu0 %415, %v21_v0   ;;  %28 = vperm.xlu1 %416, %v19_v1   ;;  %v20_v3 = vld [vmem:[%s580_s0 + $0x10] sm:$0xff]  ;;  %v18_v4 = vld [vmem:[%s580_s0] sm:$0xff]  ;;  %v440_v5 = vmov 0.0   ;;  %vm441_vm0 = vmmov 0   ;;  %v22_v21 = vlaneseq }
   0x3   :  { %353 = vmatprep.subr.mxu0 %v440_v5  ;;  %364 = vmatprep.subr.mxu1 %v440_v5  ;;  %v145_v6 = vld [vmem:[%s581_s1 + $0x78] sm:$0xff]  ;;  %v144_v7 = vld [vmem:[%s581_s1 + $0x70] sm:$0xff]  ;;  %v143_v8 = vld [vmem:[%s581_s1 + $0x68] sm:$0xff]  ;;  %v442_v28 = vmov 1.0   ;;  %vm56_vm7 = vcmask 261120   ;;  %s443_s10 = smov [#allocation2]  }
   0x4   :  { %361 = vmatprep.mubr.msk.f32.mxu0 %vm441_vm0, %v440_v5  ;;  %396 = vmatprep.mubr.msk.f32.mxu1 %vm441_vm0, %v440_v5  ;;  %v142_v9 = vld [vmem:[%s581_s1 + $0x60] sm:$0xff]  ;;  %v141_v10 = vld [vmem:[%s581_s1 + $0x58] sm:$0xff]  ;;  %v140_v11 = vld [vmem:[%s581_s1 + $0x50] sm:$0xff]  ;;  %v49_v22 = vshrl.u32 %v22_v21, 7  ;;  %v23_v24 = vand.u32 127, %v22_v21  ;;  %s307_s11 = sshll.u32 %s443_s10, 4  ;;  %s308_s11 = int_to_ptr.vmem [resolvable:$true] %s307_s11 }
   0x5   :  { %365 = vmatpush3.msra.mxu1 %v145_v6  ;;  %v139_v12 = vld [vmem:[%s581_s1 + $0x48] sm:$0xff]  ;;  %v138_v13 = vld [vmem:[%s581_s1 + $0x40] sm:$0xff]  ;;  %v137_v14 = vld [vmem:[%s581_s1 + $0x38] sm:$0xff]  ;;  %s417_s12 = scalar_lea.vmem %s308_s11, 64  ;;  %p422_p1 = scmp.lt.s32.totalorder %s308_s11, %s308_s11 }
   0x6   :  { %31 = vperm.xlu0 %415, %v20_v3   ;;  %25 = vperm.xlu1 %416, %v18_v4   ;;  %v136_v15 = vld [vmem:[%s581_s1 + $0x30] sm:$0xff]  ;;  %v135_v16 = vld [vmem:[%s581_s1 + $0x28] sm:$0xff]  ;;  %v134_v17 = vld [vmem:[%s581_s1 + $0x20] sm:$0xff]  ;;  %v50_v23 = vmul.u32 8, %v49_v22  ;;  %p418_p0 = scmp.ne.s32.totalorder %s308_s11, %s417_s12  ;;  %p423_p2 = scmp.lt.s32.totalorder %s417_s12, %s417_s12 }
   0x7   :  { %366 = vmatprep.subr.mxu1 %v440_v5  ;;  %v133_v18 = vld [vmem:[%s581_s1 + $0x18] sm:$0xff]  ;;  %v132_v19 = vld [vmem:[%s581_s1 + $0x10] sm:$0xff]  ;;  %v131_v20 = vld [vmem:[%s581_s1 + $0x8] sm:$0xff] }
   0x8   :  { %367 = vmatpush3.msra.mxu1 %v144_v7  ;;  %v52_v25 = vadd.s32 8, %v50_v23  ;;  %vm51_vm2 = vcmp.ge.s32.totalorder %v23_v24, %v50_v23  ;;  %v130_v32 = vld [vmem:[%s581_s1] sm:$0xff]  ;;  %v219_v33 = vld [vmem:[%s582_s2 + $0x18] sm:$0xff]  ;;  %v218_v34 = vld [vmem:[%s582_s2 + $0x10] sm:$0xff]  ;;  %p424_p3 = por %p423_p2, %p422_p1 }
   0x9   :  { %368 = vmatprep.subr.mxu1 %v440_v5  ;;  %v217_v35 = vld [vmem:[%s582_s2 + $0x8] sm:$0xff]  ;;  %v216_v38 = vld [vmem:[%s582_s2] sm:$0xff] }
   0xa   :  { %369 = vmatpush3.msra.mxu1 %v143_v8  ;;  %vm53_vm3 = vcmp.lt.s32.totalorder %v23_v24, %v52_v25  ;;  %v324_v41 = vld [vmem:[%s583_s3] ss:$0 sm:$0xff]  ;;  %p425_p4 = pnand %p424_p3, %p418_p0 }
   0xb   :  { %370 = vmatprep.subr.mxu1 %v440_v5  ;;  %vm54_vm5 = vmand %vm51_vm2, %vm53_vm3 }
   0xc   :  { %371 = vmatpush3.msra.mxu1 %v142_v9  ;;  %v55_v31 = vsel %vm54_vm5, 0.125, %v440_v5 }
   0xd   :  { %372 = vmatprep.subr.mxu1 %v440_v5 }
   0xe   :  { %373 = vmatpush3.msra.mxu1 %v141_v10 }
   0xf   :  { %374 = vmatprep.subr.mxu1 %v440_v5 }
  0x10   :  { %375 = vmatpush3.msra.mxu1 %v140_v11 }
  0x11   :  { %376 = vmatprep.subr.mxu1 %v440_v5 }
  0x12   :  { %377 = vmatpush3.msra.mxu1 %v139_v12 }
  0x13   :  { %378 = vmatprep.subr.mxu1 %v440_v5 }
  0x14   :  { %379 = vmatpush3.msra.mxu1 %v138_v13 }
  0x15   :  { %380 = vmatprep.subr.mxu1 %v440_v5 }
  0x16   :  { %381 = vmatpush3.msra.mxu1 %v137_v14 }
  0x17   :  { %382 = vmatprep.subr.mxu1 %v440_v5 }
  0x18   :  { %383 = vmatpush3.msra.mxu1 %v136_v15 }
  0x19   :  { %384 = vmatprep.subr.mxu1 %v440_v5 }
  0x1a   :  { %385 = vmatpush3.msra.mxu1 %v135_v16 }
  0x1b   :  { %386 = vmatprep.subr.mxu1 %v440_v5 }
  0x1c   :  { %387 = vmatpush3.msra.mxu1 %v134_v17 }
  0x1d   :  { %388 = vmatprep.subr.mxu1 %v440_v5 }
  0x1e   :  { %389 = vmatpush3.msra.mxu1 %v133_v18 }
  0x1f   :  { %390 = vmatprep.subr.mxu1 %v440_v5 }
  0x20   :  { %391 = vmatpush3.msra.mxu1 %v132_v19 }
  0x21   :  { %392 = vmatprep.subr.mxu1 %v440_v5 }
  0x22   :  { %393 = vmatpush3.msra.mxu1 %v131_v20 }
  0x23   :  { %394 = vmatprep.subr.mxu1 %v440_v5 }
  0x24   :  { %395 = vmatpush3.msra.mxu1 %v130_v32 }
  0x7d   :  { %v35_v26 = vpop.permute.xlu0 %34  ;;  %v29_v27 = vpop.permute.xlu1 %28 }
  0x7e   :  { %vm39_vm1 = vcmp.eq.s32.totalorder %v35_v26, %v23_v24  ;;  %vm37_vm6 = vcmp.eq.s32.totalorder %v29_v27, %v23_v24 }
  0x7f   :  { %354 = vmatpush3.msk.msra.mxu0 %vm39_vm1, %v442_v28 }
  0x80   :  { %355 = vmatprep.subr.mxu0 %v440_v5 }
  0x81   :  { %v32_v29 = vpop.permute.xlu0 %31  ;;  %v26_v30 = vpop.permute.xlu1 %25 }
  0x82   :  { %vm38_vm4 = vcmp.eq.s32.totalorder %v32_v29, %v23_v24  ;;  %vm36_vm8 = vcmp.eq.s32.totalorder %v26_v30, %v23_v24 }
  0x83   :  { %356 = vmatpush3.msk.msra.mxu0 %vm38_vm4, %v442_v28 }
  0x84   :  { %357 = vmatprep.subr.mxu0 %v440_v5 }
  0x85   :  { %358 = vmatpush3.msk.msra.mxu0 %vm37_vm6, %v442_v28 }
  0x86   :  { %359 = vmatprep.subr.mxu0 %v440_v5 }
  0x87   :  { %360 = vmatpush3.msk.msra.mxu0 %vm36_vm8, %v442_v28 }
  0x88   :  { %362 = vmatmul.mubr.msk.f32.vlgmr.msra.gmra.mxu0 %vm56_vm7, %v55_v31  ;;  %399 = vmatprep.subr.mxu0 %v440_v5 }
  0x89   :  { %407 = vmatprep.mubr.msk.f32.mxu0 %vm441_vm0, %v440_v5  ;;  %400 = vmatpush3.msra.mxu0 %v219_v33 }
  0x8a   :  { %401 = vmatprep.subr.mxu0 %v440_v5 }
  0x8b   :  { %402 = vmatpush3.msra.mxu0 %v218_v34 }
  0x8c   :  { %403 = vmatprep.subr.mxu0 %v440_v5 }
  0x8d   :  { %404 = vmatpush3.msra.mxu0 %v217_v35 }
  0x8e   :  { %405 = vmatprep.subr.mxu0 %v440_v5 }
  0x8f   :  { %406 = vmatpush3.msra.mxu0 %v216_v38 }
 0x148   :  { %v126_v36 = vpop.f32.mrf.mxu0 }
 0x149   :  { %397 = vmatmul.mubr.f32.vlgmr.msra.gmra.mxu1 %v126_v36 }
 0x14a   :  { %v363_v37 = vpop.f32.mrf.mxu0 }
 0x209   :  { %v212_v39 = vpop.f32.mrf.mxu1 }
 0x20a   :  { %408 = vmatmul.mubr.msk.f32.vlgmr.msra.gmra.mxu0 %vm56_vm7, %v212_v39 }
 0x20b   :  { %v398_v40 = vpop.f32.mrf.mxu1 }
 0x2ca   :  { %v296_v42 = vpop.f32.mrf.mxu0 }
 0x2cb   :  { %v297_v43 = vadd.f32 %v324_v41, %v296_v42 }
 0x2cc   :  { %v409_v44 = vpop.f32.mrf.mxu0 }
 0x2cd   :  { %300 = vst [vmem:[#allocation2] sm:$0xf] %v297_v43 }
 0x2ce   :  { %428 = shalt.err (!%p425_p4)
}
 0x2cf   :  { %310 = dma.vmem_to_hbm [thread:$0]  %s308_s11, 64, %s584_s4, [#allocation3]  }
 0x2d0   :  { %437 = dma.done.wait [#allocation3], 64  }
 0x2d1   :  { %438 = vsyncadd [#allocation3], 4294967232 }
 0x2d2   :  { %314 = vsyncpa [#allocation3], 1 }

</bundles_post_ra>
